<compile_context>
chip_gen: v6e
topology: v6e:2x2x1
jax: 0.10.0
libtpu: 0.0.40
codegen_flags: <defaults>
</compile_context>

<pallas_src>
import jax
import jax.numpy as jnp
from jax.experimental import pallas as pl
from jax.experimental.pallas import tpu as pltpu

INPUT_SIZE = 5
OUTPUT_SIZE = 2


def _round_up(n, m):
    return ((n + m - 1) // m) * m


def linear_kernel(x_ref, w_ref, b_ref, o_ref, acc_ref):
    # x_ref: (tm, tk) ; w_ref: (tk, tn) ; b_ref: (1, tn) ; o_ref/acc_ref: (tm, tn)
    k = pl.program_id(2)

    @pl.when(k == 0)
    def _():
        acc_ref[...] = jnp.zeros_like(acc_ref)

    # TODO(synk): for large shapes on v6e/v7x, cast x/w tiles to bf16 here (keep the
    # f32 accumulator) to double MXU throughput; kept f32 end-to-end for these sizes.
    acc_ref[...] += jnp.dot(x_ref[...], w_ref[...],
                            preferred_element_type=jnp.float32)

    @pl.when(k == pl.num_programs(2) - 1)
    def _():
        o_ref[...] = (acc_ref[...] + b_ref[...]).astype(o_ref.dtype)


def prepare_linear_params(weight, bias):
    """One-time init-time prep (NOT in the per-call hot path).

    weight: [out, in] (PyTorch layout), bias: [out].
    Returns W^T zero-padded to [in, out_pad] and bias as [1, out_pad], with
    out_pad a multiple of 128 so the kernel's output lane dim is dense.
    """
    out_f, in_f = weight.shape
    out_pad = _round_up(out_f, 128)
    w_t = jnp.zeros((in_f, out_pad), weight.dtype).at[:, :out_f].set(weight.T)
    b = jnp.zeros((1, out_pad), bias.dtype).at[0, :out_f].set(bias)
    return w_t, b


def linear_forward(x, w_t_pad, b_pad, out_features, *, tm=128, tn=128, tk=256):
    """x: [B, in_f]; w_t_pad: [in_f, out_pad]; b_pad: [1, out_pad] (from prepare_linear_params)."""
    B, in_f = x.shape
    in_w, out_pad = w_t_pad.shape
    assert in_w == in_f and out_pad % 128 == 0

    # Batch (sublane) padding: multiple of 8 for small batches, multiple of tm when tiling.
    if B <= tm:
        tm_eff = _round_up(B, 8)
        b_padded = tm_eff
    else:
        tm_eff = tm
        b_padded = _round_up(B, tm)
    if b_padded != B:
        x = jnp.zeros((b_padded, in_f), x.dtype).at[:B].set(x)

    # K tiling: one full-K block when it fits, else tk-sized chunks.
    tk_eff = in_f if in_f <= tk else tk
    assert in_f % tk_eff == 0  # TODO(synk): zero-pad K for in_f not a multiple of tk
    tn_eff = min(tn, out_pad)

    grid = (b_padded // tm_eff, out_pad // tn_eff, in_f // tk_eff)

    flops = 2 * b_padded * in_f * out_pad
    bytes_accessed = 4 * (b_padded * in_f + in_f * out_pad + out_pad
                          + b_padded * out_pad)

    out_padded = pl.pallas_call(
        linear_kernel,
        out_shape=jax.ShapeDtypeStruct((b_padded, out_pad), x.dtype),
        grid=grid,
        in_specs=[
            pl.BlockSpec((tm_eff, tk_eff), lambda i, j, k: (i, k)),
            pl.BlockSpec((tk_eff, tn_eff), lambda i, j, k: (k, j)),
            pl.BlockSpec((1, tn_eff), lambda i, j, k: (0, j)),
        ],
        out_specs=pl.BlockSpec((tm_eff, tn_eff), lambda i, j, k: (i, j)),
        scratch_shapes=[pltpu.VMEM((tm_eff, tn_eff), jnp.float32)],
        compiler_params=pltpu.CompilerParams(
            dimension_semantics=("parallel", "parallel", "arbitrary"),
        ),
        cost_estimate=pl.CostEstimate(
            flops=flops, transcendentals=0, bytes_accessed=bytes_accessed),
    )(x, w_t_pad, b_pad)

    # Strip padding (cheap XLA slice).
    return out_padded[:B, :out_features]


if __name__ == "__main__":
    key = jax.random.PRNGKey(0)
    k_x, k_w, k_b = jax.random.split(key, 3)

    batch = 8
    # Deterministic params mimicking nn.Linear's uniform(-1/sqrt(in), 1/sqrt(in)) init.
    bound = 1.0 / (INPUT_SIZE ** 0.5)
    weight = jax.random.uniform(
        k_w, (OUTPUT_SIZE, INPUT_SIZE), jnp.float32, minval=-bound, maxval=bound)
    bias = jax.random.uniform(
        k_b, (OUTPUT_SIZE,), jnp.float32, minval=-bound, maxval=bound)
    x = jax.random.normal(k_x, (batch, INPUT_SIZE), jnp.float32)

    # One-time parameter prep (transpose + lane padding), outside the hot path.
    w_t_pad, b_pad = prepare_linear_params(weight, bias)

    out = linear_forward(x, w_t_pad, b_pad, OUTPUT_SIZE)
    out = jax.block_until_ready(out)

    # Reference check against plain JAX (same math as nn.Linear forward).
    ref = x @ weight.T + bias
    assert out.shape == (batch, OUTPUT_SIZE)
    assert jnp.allclose(out, ref, atol=1e-5, rtol=1e-5)

    # The PyTorch module's print() of tensor sizes is host-side logging, not compute.
    print("\tIn Model: input size", x.shape, "output size", out.shape)
    print("KERNEL_OK")
</pallas_src>

<mosaic_0001>
module attributes {stable_mosaic.version = 11 : i64} {
  func.func @linear_kernel(%arg0: i32, %arg1: i32, %arg2: i32, %arg3: memref<8x5xf32, #tpu.memory_space<vmem>>, %arg4: memref<5x128xf32, #tpu.memory_space<vmem>>, %arg5: memref<1x128xf32, #tpu.memory_space<vmem>>, %arg6: memref<8x128xf32, #tpu.memory_space<vmem>>, %arg7: memref<8x128xf32, #tpu.memory_space<vmem>>) attributes {dimension_semantics = [#tpu.dimension_semantics<parallel>, #tpu.dimension_semantics<parallel>, #tpu.dimension_semantics<arbitrary>], iteration_bounds = array<i64: 1, 1, 1>, scalar_prefetch = 0 : i64, scratch_operands = 1 : i64, tpu.core_type = #tpu.core_type<tc>, window_params = [{transform_indices = @transform_0, window_bounds = array<i64: 8, 5>}, {transform_indices = @transform_1, window_bounds = array<i64: 5, 128>}, {transform_indices = @transform_2, window_bounds = array<i64: 1, 128>}, {transform_indices = @transform_3, window_bounds = array<i64: 8, 128>}]} {
    %c0_i32 = arith.constant 0 : i32
    %0 = arith.cmpi eq, %arg2, %c0_i32 : i32
    %1 = arith.extui %0 : i1 to i32
    %c0_i32_0 = arith.constant 0 : i32
    %2 = arith.cmpi ne, %1, %c0_i32_0 : i32
    scf.if %2 {
      %cst_10 = arith.constant 0.000000e+00 : f32
      %12 = vector.broadcast %cst_10 : f32 to vector<8x128xf32>
      %c0_11 = arith.constant 0 : index
      %c0_12 = arith.constant 0 : index
      %13 = vector.load %arg7[%c0_11, %c0_12] : memref<8x128xf32, #tpu.memory_space<vmem>>, vector<8x128xf32>
      tpu.vector_store %arg7[%c0_11, %c0_12], %12 {strides = array<i32>} : memref<8x128xf32, #tpu.memory_space<vmem>>, vector<8x128xf32>,
    } else {
    }
    %c0 = arith.constant 0 : index
    %c0_1 = arith.constant 0 : index
    %3 = vector.load %arg7[%c0, %c0_1] : memref<8x128xf32, #tpu.memory_space<vmem>>, vector<8x128xf32>
    %c0_2 = arith.constant 0 : index
    %c0_3 = arith.constant 0 : index
    %4 = vector.load %arg3[%c0_2, %c0_3] : memref<8x5xf32, #tpu.memory_space<vmem>>, vector<8x5xf32>
    %c0_4 = arith.constant 0 : index
    %c0_5 = arith.constant 0 : index
    %5 = vector.load %arg4[%c0_4, %c0_5] : memref<5x128xf32, #tpu.memory_space<vmem>>, vector<5x128xf32>
    %cst = arith.constant dense<0.000000e+00> : vector<8x128xf32>
    %6 = tpu.matmul %4, %5, %cst {dimension_numbers = #tpu.dot_dimension_numbers<[1], [0], [0], [1], [0, 0, 1, 1], [], []>} : vector<8x5xf32>, vector<5x128xf32>, vector<8x128xf32> -> vector<8x128xf32>
    %7 = arith.addf %3, %6 : vector<8x128xf32>
    %c0_6 = arith.constant 0 : index
    %c0_7 = arith.constant 0 : index
    %8 = vector.load %arg7[%c0_6, %c0_7] : memref<8x128xf32, #tpu.memory_space<vmem>>, vector<8x128xf32>
    tpu.vector_store %arg7[%c0_6, %c0_7], %7 {strides = array<i32>} : memref<8x128xf32, #tpu.memory_space<vmem>>, vector<8x128xf32>,
    %c0_i32_8 = arith.constant 0 : i32
    %9 = arith.cmpi eq, %arg2, %c0_i32_8 : i32
    %10 = arith.extui %9 : i1 to i32
    %c0_i32_9 = arith.constant 0 : i32
    %11 = arith.cmpi ne, %10, %c0_i32_9 : i32
    scf.if %11 {
      %c0_10 = arith.constant 0 : index
      %c0_11 = arith.constant 0 : index
      %12 = vector.load %arg7[%c0_10, %c0_11] : memref<8x128xf32, #tpu.memory_space<vmem>>, vector<8x128xf32>
      %c0_12 = arith.constant 0 : index
      %c0_13 = arith.constant 0 : index
      %13 = vector.load %arg5[%c0_12, %c0_13] : memref<1x128xf32, #tpu.memory_space<vmem>>, vector<1x128xf32>
      %14 = vector.broadcast %13 : vector<1x128xf32> to vector<8x128xf32>
      %15 = arith.addf %12, %14 : vector<8x128xf32>
      %c0_14 = arith.constant 0 : index
      %c0_15 = arith.constant 0 : index
      %16 = vector.load %arg6[%c0_14, %c0_15] : memref<8x128xf32, #tpu.memory_space<vmem>>, vector<8x128xf32>
      tpu.vector_store %arg6[%c0_14, %c0_15], %15 {strides = array<i32>} : memref<8x128xf32, #tpu.memory_space<vmem>>, vector<8x128xf32>,
    } else {
    }
    return
  }
  func.func @transform_0(%arg0: i32, %arg1: i32, %arg2: i32) -> (i32, i32) {
    %c0_i32 = arith.constant 0 : i32
    return %arg0, %arg2 : i32, i32
  }
  func.func @transform_1(%arg0: i32, %arg1: i32, %arg2: i32) -> (i32, i32) {
    %c0_i32 = arith.constant 0 : i32
    return %arg2, %arg1 : i32, i32
  }
  func.func @transform_2(%arg0: i32, %arg1: i32, %arg2: i32) -> (i32, i32) {
    %c0_i32 = arith.constant 0 : i32
    %c0_i32_0 = arith.constant 0 : i32
    return %c0_i32, %arg1 : i32, i32
  }
  func.func @transform_3(%arg0: i32, %arg1: i32, %arg2: i32) -> (i32, i32) {
    %c0_i32 = arith.constant 0 : i32
    return %arg0, %arg1 : i32, i32
  }
}

</mosaic_0001>

<bundles_post_ra>
// kernel: tpu_custom_call.1
= control target key start
LH: loop header
LB: loop body
LE: loop exit
PB: predicated region body
PF: predicated region fallthrough
CT: control target
= control target key end

     0   :  { %8 = vsyncpa [#allocation4], 0  ;;  %s274_s0 = inlined_call_operand.hbm [shape: f32[8,5], index: 0, kind: input, shape index: {}]   ;;  %s275_s1 = inlined_call_operand.hbm [shape: f32[5,128], index: 1, kind: input, shape index: {}]   ;;  %s276_s2 = inlined_call_operand.vmem [shape: f32[1,128], index: 2, kind: input, shape index: {}]   ;;  %s277_s3 = inlined_call_operand.hbm [shape: f32[8,128], index: 3, kind: output, shape index: {}]  }
   0x1   :  { %9 = vsyncpa [#allocation7], 0 }
   0x2   :  { %10 = vsyncpa [#allocation5], 0  ;;  %s237_s12 = smov [#allocation3]   ;;  %s238_s14 = smov [#allocation6]  }
   0x3   :  { %s17_s13 = sshll.u32 %s237_s12, 4  ;;  %s27_s15 = sshll.u32 %s238_s14, 4  ;;  %s18_s13 = int_to_ptr.vmem [resolvable:$true] %s17_s13  ;;  %s28_s15 = int_to_ptr.vmem [resolvable:$true] %s27_s15 }
   0x4   :  { %s179_s16 = scalar_lea.vmem %s18_s13, 128  ;;  %p184_p1 = scmp.lt.s32.totalorder %s18_s13, %s18_s13 }
   0x5   :  { %p180_p0 = scmp.ne.s32.totalorder %s18_s13, %s179_s16  ;;  %p185_p2 = scmp.lt.s32.totalorder %s179_s16, %s179_s16 }
   0x7   :  { %p186_p3 = por %p185_p2, %p184_p1 }
   0x9   :  { %p187_p4 = pnand %p186_p3, %p180_p0 }
   0xb   :  { %190 = shalt.err (!%p187_p4)
}
   0xc   :  { %20 = dma.hbm_to_vmem [thread:$0]  %s274_s0, 128, %s18_s13, [#allocation4]  }
   0xd   :  { %s199_s19 = scalar_lea.vmem %s28_s15, 128  ;;  %p204_p6 = scmp.lt.s32.totalorder %s28_s15, %s28_s15 }
   0xe   :  { %p200_p5 = scmp.ne.s32.totalorder %s28_s15, %s199_s19  ;;  %p205_p7 = scmp.lt.s32.totalorder %s199_s19, %s199_s19 }
  0x10   :  { %p206_p8 = por %p205_p7, %p204_p6 }
  0x12   :  { %p207_p9 = pnand %p206_p8, %p200_p5 }
  0x14   :  { %210 = shalt.err (!%p207_p9)
}
  0x15   :  { %30 = dma.hbm_to_vmem [thread:$0]  %s275_s1, 128, %s28_s15, [#allocation7]  }
  0x16   :  { %231 = dma.done.wait [#allocation4], 128  }
  0x17   :  { %232 = vsyncadd [#allocation4], 4294967168 }
  0x18   :  { %233 = dma.done.wait [#allocation7], 128  }
  0x19   :  { %234 = vsyncadd [#allocation7], 4294967168  ;;  %v239_v0 = vmov 0.0   ;;  %vm240_vm0 = vmmov 0   ;;  %vm51_vm1 = vcmask 1044480   ;;  %vm47_vm2 = vcmask 39936  }
  0x1a   :  { %161 = vmatprep.subr.mxu0 %v239_v0  ;;  %163 = vmatprep.mubr.msk.f32.mxu0 %vm240_vm0, %v239_v0  ;;  %v46_v1 = vld [vmem:[#allocation6] sm:$0x1f]  ;;  %v45_v2 = vld [vmem:[#allocation3] sm:$0xff]  ;;  %s241_s23 = smov [#allocation8]  }
  0x1b   :  { %162 = vmatpush3.msk.msra.mxu0 %vm51_vm1, %v46_v1  ;;  %v158_v3 = vld [vmem:[%s276_s2] ss:$0 sm:$0xff]  ;;  %s146_s1 = sshll.u32 %s241_s23, 4  ;;  %s147_s1 = int_to_ptr.vmem [resolvable:$true] %s146_s1 }
  0x1c   :  { %164 = vmatmul.mubr.msk.f32.vlgmr.msra.gmra.mxu0 %vm47_vm2, %v45_v2  ;;  %s211_s24 = scalar_lea.vmem %s147_s1, 128  ;;  %p216_p11 = scmp.lt.s32.totalorder %s147_s1, %s147_s1 }
  0x1d   :  { %p212_p10 = scmp.ne.s32.totalorder %s147_s1, %s211_s24  ;;  %p217_p12 = scmp.lt.s32.totalorder %s211_s24, %s211_s24 }
  0x1f   :  { %p218_p13 = por %p217_p12, %p216_p11 }
  0x21   :  { %p219_p0 = pnand %p218_p13, %p212_p10 }
  0xdc   :  { %v121_v4 = vpop.f32.mrf.mxu0 }
  0xdd   :  { %v138_v5 = vadd.f32 %v158_v3, %v121_v4 }
  0xde   :  { %v165_v6 = vpop.f32.mrf.mxu0 }
  0xdf   :  { %139 = vst [vmem:[#allocation8] sm:$0xff] %v138_v5 }
  0xe0   :  { %222 = shalt.err (!%p219_p0)
}
  0xe1   :  { %149 = dma.vmem_to_hbm [thread:$0]  %s147_s1, 128, %s277_s3, [#allocation5]  }
  0xe2   :  { %235 = dma.done.wait [#allocation5], 128  }
  0xe3   :  { %236 = vsyncadd [#allocation5], 4294967168 }
  0xe4   :  { %153 = vsyncpa [#allocation4], 1 }
  0xe5   :  { %154 = vsyncpa [#allocation7], 1 }
  0xe6   :  { %155 = vsyncpa [#allocation5], 1 }

</bundles_post_ra>
